<compile_context>
chip_gen: v6e
topology: v6e:2x2x1
jax: 0.10.0
libtpu: 0.0.40
codegen_flags: <defaults>
</compile_context>

<pallas_src>
import functools

import jax
import jax.numpy as jnp
import numpy as np
from jax import lax
from jax.experimental import pallas as pl
from jax.experimental.pallas import tpu as pltpu

IMG_W = 1440.0
IMG_H = 2560.0


def _make_overlap_kernel(n_real, half):
    """Row-tiled kernel; one grid step handles TR query rows vs all Np boxes."""

    def kernel(xyxy_ref, ids_row_ref, ids_col_ref, par_col_ref,
               iou_ref, legal_ref, last_ref):
        tr = ids_col_ref.shape[0]
        n = ids_row_ref.shape[1]
        pid = pl.program_id(0)
        r0 = pl.multiple_of(pid * tr, tr)

        xyxy = xyxy_ref[...]                         # (Np, 4) pixel xyxy (all boxes)
        pxyxy = xyxy_ref[pl.ds(r0, tr), :]           # (TR, 4) this block's pred boxes
        px1 = pxyxy[:, 0:1]
        py1 = pxyxy[:, 1:2]
        px2 = pxyxy[:, 2:3]
        py2 = pxyxy[:, 3:4]

        ids_r = ids_row_ref[...]                     # (1, Np)  int32
        ids_c = ids_col_ref[...]                     # (TR, 1)  int32
        par_c = par_col_ref[...]                     # (TR, 1)  int32

        col_i = lax.broadcasted_iota(jnp.int32, (tr, n), 1)
        row_gi = r0 + lax.broadcasted_iota(jnp.int32, (tr, 1), 0)   # global row idx

        # torch.unique(id): row j is the "last occurrence" of its id iff the
        # largest column index sharing its id is j itself.  Padding rows are
        # excluded via row_gi < n_real.
        same_id = ids_c == ids_r                                       # (TR, Np)
        self_last = jnp.max(jnp.where(same_id, col_i, -1),
                            axis=1, keepdims=True)                     # (TR, 1)
        is_last = jnp.logical_and(self_last == row_gi, row_gi < n_real)

        # Target box = box at the LAST index whose id equals parent_id[j].
        # Build the one-hot row and gather all 4 coords with one MXU matmul.
        # TODO(synk): rows whose parent_id never occurs in `id` get an all-zero
        # target box instead of PyTorch's raw-index fallback (never legal here).
        p_match = par_c == ids_r                                       # (TR, Np)
        last_idx = jnp.max(jnp.where(p_match, col_i, -1),
                           axis=1, keepdims=True)                      # (TR, 1)
        lastmatch = jnp.logical_and(p_match, col_i == last_idx)        # one-hot/zero
        tgt = jnp.dot(lastmatch.astype(jnp.float32), xyxy,
                      preferred_element_type=jnp.float32)              # (TR, 4)
        tx1 = tgt[:, 0:1]
        ty1 = tgt[:, 1:2]
        tx2 = tgt[:, 2:3]
        ty2 = tgt[:, 3:4]

        # get_iou semantics: intersection area divided by the *pred* box area.
        x_left = jnp.maximum(px1, tx1)
        y_top = jnp.maximum(py1, ty1)
        x_right = jnp.minimum(px2, tx2)
        y_bot = jnp.minimum(py2, ty2)

        sel = jnp.logical_and(is_last, (ids_c % half) != 0)
        legal = jnp.logical_and(
            sel, jnp.logical_and(x_right >= x_left, y_bot >= y_top))

        inter = (x_right - x_left) * (y_bot - y_top)
        area1 = (px2 - px1) * (py2 - py1)
        # Raw division like the reference: a legal zero-area pred box produces
        # inf/nan, which the wrapper's [0, 1] guard then zeroes (torch behavior).
        ratio = jnp.where(legal, inter / area1, 0.0)

        def _store(ref, col):
            part = jnp.sum(col, axis=0, keepdims=True)                 # (1, 1)
            ref[...] = jnp.broadcast_to(part.reshape(1, 1, 1), ref.shape)

        _store(iou_ref, ratio)
        _store(legal_ref, legal.astype(jnp.float32))
        _store(last_ref, is_last.astype(jnp.float32))

    return kernel


def _pick_tile(n_pad):
    # Largest row tile that divides the padded N and keeps ~6 live (TR, Np)
    # f32/i32 slabs comfortably inside a 24 MiB working set (safe for the
    # 32 MiB scoped-VMEM budget on all of v5e / v6e / v7x).
    for tr in (512, 256, 128):
        if n_pad % tr == 0 and 6 * tr * n_pad * 4 <= 24 * 1024 * 1024:
            return tr
    return 128


def _overlap_pallas(xyxy, ids_row, ids_col, par_col, n_real, half, tr):
    n_pad = ids_row.shape[1]
    g = n_pad // tr
    kernel = _make_overlap_kernel(n_real, half)
    out_block = pl.BlockSpec((1, 8, 128), lambda i: (i, 0, 0))
    grid_spec = pltpu.PrefetchScalarGridSpec(
        num_scalar_prefetch=0,
        grid=(g,),
        in_specs=[
            pl.BlockSpec((n_pad, 4), lambda i: (0, 0)),   # xyxy, resident
            pl.BlockSpec((1, n_pad), lambda i: (0, 0)),   # ids row form
            pl.BlockSpec((tr, 1), lambda i: (i, 0)),      # ids col block
            pl.BlockSpec((tr, 1), lambda i: (i, 0)),      # parent col block
        ],
        out_specs=(out_block, out_block, out_block),
    )
    out_shape = (jax.ShapeDtypeStruct((g, 8, 128), jnp.float32),) * 3
    return pl.pallas_call(
        kernel,
        grid_spec=grid_spec,
        out_shape=out_shape,
        compiler_params=pltpu.CompilerParams(
            dimension_semantics=("parallel",),
            vmem_limit_bytes=32 * 1024 * 1024,
        ),
    )(xyxy, ids_row, ids_col, par_col)


@functools.partial(jax.jit, static_argnames=("reduction",))
def overlap_loss(pred_boxes, id_, parent_id, type_id, reduction="sum"):
    """JAX/Pallas equivalent of OverlapLoss.forward (type_id is unused)."""
    del type_id  # sliced but never used by the PyTorch forward
    B, S = id_.shape
    half = S // 2
    n_real = B * S // 2

    boxes = pred_boxes.reshape(-1, 4)[1::2].astype(jnp.float32)      # (N, 4)
    offs = jnp.arange(B, dtype=jnp.int32)[:, None] * half            # (B, 1)
    idl = (id_.astype(jnp.int32) + offs).reshape(-1)[1::2]           # (N,)
    pidl = (parent_id.astype(jnp.int32) + offs).reshape(-1)[1::2]    # (N,)

    # xcycwh (normalized) -> pixel xyxy; cheap element-wise prep in XLA.
    scale = jnp.array([IMG_W, IMG_H, IMG_W, IMG_H], jnp.float32)
    bp = boxes * scale
    xyxy = jnp.concatenate([bp[:, :2] - 0.5 * bp[:, 2:],
                            bp[:, :2] + 0.5 * bp[:, 2:]], axis=1)    # (N, 4)

    # Pad N to a lane-friendly multiple of 128; sentinel ids never match.
    n_pad = 128 * ((n_real + 127) // 128)
    tr = _pick_tile(n_pad)
    pad = n_pad - n_real
    xyxy_p = jnp.pad(xyxy, ((0, pad), (0, 0)))
    idl_p = jnp.pad(idl, (0, pad), constant_values=-1)
    pidl_p = jnp.pad(pidl, (0, pad), constant_values=-2)

    iou_o, legal_o, last_o = _overlap_pallas(
        xyxy_p,
        idl_p.reshape(1, n_pad),
        idl_p.reshape(n_pad, 1),
        pidl_p.reshape(n_pad, 1),
        n_real, half, tr)

    iou_sum = jnp.sum(iou_o[:, 0, 0])
    legal_cnt = jnp.sum(legal_o[:, 0, 0])
    last_cnt = jnp.sum(last_o[:, 0, 0])          # == len(unique ids)

    # get_iou() tail guard: no legal pair, or mean ratio outside [0, 1]
    # (including NaN/inf), drops the IoU contribution entirely.
    mean = iou_sum / jnp.maximum(legal_cnt, 1.0)
    bad = ((legal_cnt == 0.0)
           | jnp.logical_not(mean >= 0.0)
           | jnp.logical_not(mean <= 1.0))
    total_iou = jnp.where(bad, 0.0, iou_sum)

    if reduction == "sum":
        return last_cnt - total_iou
    return 1.0 - total_iou / last_cnt


def _numpy_reference(pred_boxes, id_, parent_id, reduction="sum"):
    """Direct NumPy port of the PyTorch forward (parents assumed present)."""
    B, S = id_.shape
    pb = np.asarray(pred_boxes, np.float32).reshape(-1, 4).copy()[1::2]
    offs = np.repeat(np.arange(B, dtype=np.float32) * (S / 2.0), S).reshape(B, S)
    idl = (np.asarray(id_, np.float32) + offs).reshape(-1)[1::2].astype(np.int64)
    pidl = (np.asarray(parent_id, np.float32) + offs).reshape(-1)[1::2].astype(np.int64)

    b = pb.copy()
    b[:, 0] *= IMG_W; b[:, 1] *= IMG_H; b[:, 2] *= IMG_W; b[:, 3] *= IMG_H
    c = b[:, :2].copy()
    b[:, :2] = c - b[:, 2:] / 2.0
    b[:, 2:] = c + b[:, 2:] / 2.0

    uq = np.unique(idl)
    last_pred = np.array([np.where(idl == u)[0][-1] for u in uq])
    parents = pidl[last_pred]
    last_tgt = np.array([np.where(idl == p)[0][-1] for p in parents])
    pred_sel, tgt_sel = b[last_pred], b[last_tgt]

    mask = (uq % (S / 2.0)) != 0
    bb1, bb2 = pred_sel[mask], tgt_sel[mask]
    xl = np.maximum(bb1[:, 0], bb2[:, 0]); yt = np.maximum(bb1[:, 1], bb2[:, 1])
    xr = np.minimum(bb1[:, 2], bb2[:, 2]); yb = np.minimum(bb1[:, 3], bb2[:, 3])
    legal = (xr >= xl) & (yb >= yt)
    inter = (xr - xl)[legal] * (yb - yt)[legal]
    a1 = (bb1[legal, 2] - bb1[legal, 0]) * (bb1[legal, 3] - bb1[legal, 1])
    ratios = inter / a1
    ln = ratios.shape[0]
    iou = float(ratios.sum())
    if ln == 0 or not (iou / ln >= 0.0) or not (iou / ln <= 1.0):
        iou = 0.0
    U = len(uq)
    return float(U - iou) if reduction == "sum" else float(1.0 - iou / U)


def _run_case(key, B, S, reduction):
    k1, k2 = jax.random.split(key)
    centers = jax.random.uniform(k1, (B, S, 2), minval=0.3, maxval=0.7)
    sizes = jax.random.uniform(k2, (B, S, 2), minval=0.1, maxval=0.3)
    pred_boxes = jnp.concatenate([centers, sizes], axis=-1).astype(jnp.float32)

    base_id = np.repeat(np.arange(S // 2), 2)          # [0,0,1,1,...]
    base_par = np.repeat(np.arange(S // 2) // 2, 2)    # parent = id // 2
    id_ = jnp.asarray(np.tile(base_id, (B, 1)), jnp.float32)
    parent_id = jnp.asarray(np.tile(base_par, (B, 1)), jnp.float32)
    type_id = jnp.zeros((B, S), jnp.float32)

    loss = overlap_loss(pred_boxes, id_, parent_id, type_id, reduction=reduction)
    loss = float(jax.block_until_ready(loss))
    ref = _numpy_reference(np.asarray(pred_boxes), np.asarray(id_),
                           np.asarray(parent_id), reduction=reduction)
    tol = 1e-3 * max(1.0, abs(ref)) + 1e-3
    assert abs(loss - ref) < tol, (B, S, reduction, loss, ref)


if __name__ == "__main__":
    key = jax.random.PRNGKey(0)
    k1, k2, k3 = jax.random.split(key, 3)
    # small: B=2, S=8 -> N=8 (padded to 128, single grid step)
    _run_case(k1, 2, 8, "sum")
    _run_case(k2, 2, 8, "mean")
    # larger: B=10, S=120 -> N=600 (padding to 640, multi-block grid)
    _run_case(k3, 10, 120, "sum")
    print("KERNEL_OK")
</pallas_src>

<mosaic_0001>
module attributes {stable_mosaic.version = 11 : i64} {
  func.func @kernel(%arg0: i32, %arg1: memref<128x4xf32, #tpu.memory_space<vmem>>, %arg2: memref<1x128xi32, #tpu.memory_space<vmem>>, %arg3: memref<128x1xi32, #tpu.memory_space<vmem>>, %arg4: memref<128x1xi32, #tpu.memory_space<vmem>>, %arg5: memref<1x8x128xf32, #tpu.memory_space<vmem>>, %arg6: memref<1x8x128xf32, #tpu.memory_space<vmem>>, %arg7: memref<1x8x128xf32, #tpu.memory_space<vmem>>) attributes {dimension_semantics = [#tpu.dimension_semantics<parallel>], iteration_bounds = array<i64: 1>, scalar_prefetch = 0 : i64, scratch_operands = 0 : i64, tpu.core_type = #tpu.core_type<tc>, window_params = [{pipeline_mode = #tpu.pipeline_mode<synchronous>, transform_indices = @transform_0, window_bounds = array<i64: 128, 4>}, {pipeline_mode = #tpu.pipeline_mode<synchronous>, transform_indices = @transform_1, window_bounds = array<i64: 1, 128>}, {transform_indices = @transform_2, window_bounds = array<i64: 128, 1>}, {transform_indices = @transform_3, window_bounds = array<i64: 128, 1>}, {transform_indices = @transform_4, window_bounds = array<i64: 1, 8, 128>}, {transform_indices = @transform_5, window_bounds = array<i64: 1, 8, 128>}, {transform_indices = @transform_6, window_bounds = array<i64: 1, 8, 128>}]} {
    %c128_i32 = arith.constant 128 : i32
    %0 = arith.muli %arg0, %c128_i32 : i32
    %1 = tpu.assume_multiple %0, 128 : i32
    %c0 = arith.constant 0 : index
    %c0_0 = arith.constant 0 : index
    %2 = vector.load %arg1[%c0, %c0_0] : memref<128x4xf32, #tpu.memory_space<vmem>>, vector<128x4xf32>
    %3 = arith.index_cast %1 : i32 to index
    %c0_1 = arith.constant 0 : index
    %4 = vector.load %arg1[%3, %c0_1] : memref<128x4xf32, #tpu.memory_space<vmem>>, vector<128x4xf32>
    %5 = vector.extract_strided_slice %4 {offsets = [0, 0], sizes = [128, 1], strides = [1, 1]} : vector<128x4xf32> to vector<128x1xf32>
    %6 = vector.extract_strided_slice %4 {offsets = [0, 1], sizes = [128, 1], strides = [1, 1]} : vector<128x4xf32> to vector<128x1xf32>
    %7 = vector.extract_strided_slice %4 {offsets = [0, 2], sizes = [128, 1], strides = [1, 1]} : vector<128x4xf32> to vector<128x1xf32>
    %8 = vector.extract_strided_slice %4 {offsets = [0, 3], sizes = [128, 1], strides = [1, 1]} : vector<128x4xf32> to vector<128x1xf32>
    %c0_2 = arith.constant 0 : index
    %c0_3 = arith.constant 0 : index
    %9 = vector.load %arg2[%c0_2, %c0_3] : memref<1x128xi32, #tpu.memory_space<vmem>>, vector<1x128xi32>
    %c0_4 = arith.constant 0 : index
    %c0_5 = arith.constant 0 : index
    %10 = vector.load %arg3[%c0_4, %c0_5] : memref<128x1xi32, #tpu.memory_space<vmem>>, vector<128x1xi32>
    %c0_6 = arith.constant 0 : index
    %c0_7 = arith.constant 0 : index
    %11 = vector.load %arg4[%c0_6, %c0_7] : memref<128x1xi32, #tpu.memory_space<vmem>>, vector<128x1xi32>
    %12 = tpu.iota {dimensions = array<i32: 1>} : vector<128x128xi32>
    %13 = tpu.iota {dimensions = array<i32: 0>} : vector<128x1xi32>
    %14 = vector.broadcast %1 : i32 to vector<128x1xi32>
    %15 = arith.addi %14, %13 : vector<128x1xi32>
    %16 = vector.broadcast %10 : vector<128x1xi32> to vector<128x128xi32>
    %17 = vector.broadcast %9 : vector<1x128xi32> to vector<128x128xi32>
    %18 = arith.cmpi eq, %16, %17 : vector<128x128xi32>
    %c-1_i32 = arith.constant -1 : i32
    %19 = vector.broadcast %c-1_i32 : i32 to vector<128x128xi32>
    %20 = arith.select %18, %12, %19 : vector<128x128xi1>, vector<128x128xi32>
    %cst = arith.constant dense<-2147483648> : vector<128xi32>
    %21 = vector.multi_reduction <maxsi>, %20, %cst [1] : vector<128x128xi32> to vector<128xi32>
    %22 = vector.shape_cast %21 : vector<128xi32> to vector<128x1xi32>
    %23 = arith.cmpi eq, %22, %15 : vector<128x1xi32>
    %c8_i32 = arith.constant 8 : i32
    %24 = vector.broadcast %c8_i32 : i32 to vector<128x1xi32>
    %25 = arith.cmpi slt, %15, %24 : vector<128x1xi32>
    %26 = arith.andi %23, %25 : vector<128x1xi1>
    %27 = vector.broadcast %11 : vector<128x1xi32> to vector<128x128xi32>
    %28 = vector.broadcast %9 : vector<1x128xi32> to vector<128x128xi32>
    %29 = arith.cmpi eq, %27, %28 : vector<128x128xi32>
    %c-1_i32_8 = arith.constant -1 : i32
    %30 = vector.broadcast %c-1_i32_8 : i32 to vector<128x128xi32>
    %31 = arith.select %29, %12, %30 : vector<128x128xi1>, vector<128x128xi32>
    %cst_9 = arith.constant dense<-2147483648> : vector<128xi32>
    %32 = vector.multi_reduction <maxsi>, %31, %cst_9 [1] : vector<128x128xi32> to vector<128xi32>
    %33 = vector.shape_cast %32 : vector<128xi32> to vector<128x1xi32>
    %34 = vector.broadcast %33 : vector<128x1xi32> to vector<128x128xi32>
    %35 = arith.cmpi eq, %12, %34 : vector<128x128xi32>
    %36 = arith.andi %29, %35 : vector<128x128xi1>
    %37 = arith.extui %36 : vector<128x128xi1> to vector<128x128xi32>
    %38 = arith.sitofp %37 : vector<128x128xi32> to vector<128x128xf32>
    %cst_10 = arith.constant dense<0.000000e+00> : vector<128x4xf32>
    %39 = tpu.matmul %38, %2, %cst_10 {dimension_numbers = #tpu.dot_dimension_numbers<[1], [0], [0], [1], [0, 0, 1, 1], [], []>} : vector<128x128xf32>, vector<128x4xf32>, vector<128x4xf32> -> vector<128x4xf32>
    %40 = vector.extract_strided_slice %39 {offsets = [0, 0], sizes = [128, 1], strides = [1, 1]} : vector<128x4xf32> to vector<128x1xf32>
    %41 = vector.extract_strided_slice %39 {offsets = [0, 1], sizes = [128, 1], strides = [1, 1]} : vector<128x4xf32> to vector<128x1xf32>
    %42 = vector.extract_strided_slice %39 {offsets = [0, 2], sizes = [128, 1], strides = [1, 1]} : vector<128x4xf32> to vector<128x1xf32>
    %43 = vector.extract_strided_slice %39 {offsets = [0, 3], sizes = [128, 1], strides = [1, 1]} : vector<128x4xf32> to vector<128x1xf32>
    %44 = arith.maximumf %5, %40 : vector<128x1xf32>
    %45 = arith.maximumf %6, %41 : vector<128x1xf32>
    %46 = arith.minimumf %7, %42 : vector<128x1xf32>
    %47 = arith.minimumf %8, %43 : vector<128x1xf32>
    %c4_i32 = arith.constant 4 : i32
    %c0_i32 = arith.constant 0 : i32
    %48 = arith.cmpi eq, %c4_i32, %c0_i32 : i32
    %c1_i32 = arith.constant 1 : i32
    %49 = arith.select %48, %c1_i32, %c4_i32 : i32
    %50 = vector.broadcast %49 : i32 to vector<128x1xi32>
    %51 = arith.remsi %10, %50 : vector<128x1xi32>
    %c0_i32_11 = arith.constant 0 : i32
    %52 = vector.broadcast %c0_i32_11 : i32 to vector<128x1xi32>
    %53 = arith.cmpi ne, %51, %52 : vector<128x1xi32>
    %c0_i32_12 = arith.constant 0 : i32
    %54 = vector.broadcast %c0_i32_12 : i32 to vector<128x1xi32>
    %55 = arith.cmpi slt, %51, %54 : vector<128x1xi32>
    %c0_i32_13 = arith.constant 0 : i32
    %56 = arith.cmpi slt, %49, %c0_i32_13 : i32
    %57 = vector.broadcast %56 : i1 to vector<128x1xi1>
    %58 = vector.broadcast %57 : vector<128x1xi1> to vector<128x1xi1>
    %59 = arith.xori %55, %58 : vector<128x1xi1>
    %60 = arith.andi %59, %53 : vector<128x1xi1>
    %61 = vector.broadcast %49 : i32 to vector<128x1xi32>
    %62 = arith.addi %51, %61 : vector<128x1xi32>
    %63 = arith.select %60, %62, %51 : vector<128x1xi1>, vector<128x1xi32>
    %c0_i32_14 = arith.constant 0 : i32
    %64 = vector.broadcast %c0_i32_14 : i32 to vector<128x1xi32>
    %65 = arith.cmpi ne, %63, %64 : vector<128x1xi32>
    %66 = arith.andi %26, %65 : vector<128x1xi1>
    %67 = arith.cmpf oge, %46, %44 : vector<128x1xf32>
    %68 = arith.cmpf oge, %47, %45 : vector<128x1xf32>
    %69 = arith.andi %67, %68 : vector<128x1xi1>
    %70 = arith.andi %66, %69 : vector<128x1xi1>
    %71 = arith.subf %46, %44 : vector<128x1xf32>
    %72 = arith.subf %47, %45 : vector<128x1xf32>
    %73 = arith.mulf %71, %72 : vector<128x1xf32>
    %74 = arith.subf %7, %5 : vector<128x1xf32>
    %75 = arith.subf %8, %6 : vector<128x1xf32>
    %76 = arith.mulf %74, %75 : vector<128x1xf32>
    %77 = arith.divf %73, %76 : vector<128x1xf32>
    %cst_15 = arith.constant 0.000000e+00 : f32
    %78 = vector.broadcast %cst_15 : f32 to vector<128x1xf32>
    %79 = arith.select %70, %77, %78 : vector<128x1xi1>, vector<128x1xf32>
    %cst_16 = arith.constant dense<0.000000e+00> : vector<1xf32>
    %80 = vector.multi_reduction <add>, %79, %cst_16 [0] : vector<128x1xf32> to vector<1xf32>
    %81 = vector.shape_cast %80 : vector<1xf32> to vector<1x1xf32>
    %82 = vector.shape_cast %81 : vector<1x1xf32> to vector<1x1x1xf32>
    %83 = vector.shape_cast %82 : vector<1x1x1xf32> to vector<1x1x1xf32>
    %84 = vector.broadcast %83 : vector<1x1x1xf32> to vector<1x8x128xf32>
    %c0_17 = arith.constant 0 : index
    %c0_18 = arith.constant 0 : index
    %c0_19 = arith.constant 0 : index
    %85 = vector.load %arg5[%c0_17, %c0_18, %c0_19] : memref<1x8x128xf32, #tpu.memory_space<vmem>>, vector<1x8x128xf32>
    tpu.vector_store %arg5[%c0_17, %c0_18, %c0_19], %84 {strides = array<i32>} : memref<1x8x128xf32, #tpu.memory_space<vmem>>, vector<1x8x128xf32>,
    %86 = arith.extui %70 : vector<128x1xi1> to vector<128x1xi32>
    %87 = arith.sitofp %86 : vector<128x1xi32> to vector<128x1xf32>
    %cst_20 = arith.constant dense<0.000000e+00> : vector<1xf32>
    %88 = vector.multi_reduction <add>, %87, %cst_20 [0] : vector<128x1xf32> to vector<1xf32>
    %89 = vector.shape_cast %88 : vector<1xf32> to vector<1x1xf32>
    %90 = vector.shape_cast %89 : vector<1x1xf32> to vector<1x1x1xf32>
    %91 = vector.shape_cast %90 : vector<1x1x1xf32> to vector<1x1x1xf32>
    %92 = vector.broadcast %91 : vector<1x1x1xf32> to vector<1x8x128xf32>
    %c0_21 = arith.constant 0 : index
    %c0_22 = arith.constant 0 : index
    %c0_23 = arith.constant 0 : index
    %93 = vector.load %arg6[%c0_21, %c0_22, %c0_23] : memref<1x8x128xf32, #tpu.memory_space<vmem>>, vector<1x8x128xf32>
    tpu.vector_store %arg6[%c0_21, %c0_22, %c0_23], %92 {strides = array<i32>} : memref<1x8x128xf32, #tpu.memory_space<vmem>>, vector<1x8x128xf32>,
    %94 = arith.extui %26 : vector<128x1xi1> to vector<128x1xi32>
    %95 = arith.sitofp %94 : vector<128x1xi32> to vector<128x1xf32>
    %cst_24 = arith.constant dense<0.000000e+00> : vector<1xf32>
    %96 = vector.multi_reduction <add>, %95, %cst_24 [0] : vector<128x1xf32> to vector<1xf32>
    %97 = vector.shape_cast %96 : vector<1xf32> to vector<1x1xf32>
    %98 = vector.shape_cast %97 : vector<1x1xf32> to vector<1x1x1xf32>
    %99 = vector.shape_cast %98 : vector<1x1x1xf32> to vector<1x1x1xf32>
    %100 = vector.broadcast %99 : vector<1x1x1xf32> to vector<1x8x128xf32>
    %c0_25 = arith.constant 0 : index
    %c0_26 = arith.constant 0 : index
    %c0_27 = arith.constant 0 : index
    %101 = vector.load %arg7[%c0_25, %c0_26, %c0_27] : memref<1x8x128xf32, #tpu.memory_space<vmem>>, vector<1x8x128xf32>
    tpu.vector_store %arg7[%c0_25, %c0_26, %c0_27], %100 {strides = array<i32>} : memref<1x8x128xf32, #tpu.memory_space<vmem>>, vector<1x8x128xf32>,
    return
  }
  func.func @transform_0(%arg0: i32) -> (i32, i32) {
    %c0_i32 = arith.constant 0 : i32
    %c0_i32_0 = arith.constant 0 : i32
    %c0_i32_1 = arith.constant 0 : i32
    return %c0_i32, %c0_i32_0 : i32, i32
  }
  func.func @transform_1(%arg0: i32) -> (i32, i32) {
    %c0_i32 = arith.constant 0 : i32
    %c0_i32_0 = arith.constant 0 : i32
    %c0_i32_1 = arith.constant 0 : i32
    return %c0_i32, %c0_i32_0 : i32, i32
  }
  func.func @transform_2(%arg0: i32) -> (i32, i32) {
    %c0_i32 = arith.constant 0 : i32
    %c0_i32_0 = arith.constant 0 : i32
    return %arg0, %c0_i32 : i32, i32
  }
  func.func @transform_3(%arg0: i32) -> (i32, i32) {
    %c0_i32 = arith.constant 0 : i32
    %c0_i32_0 = arith.constant 0 : i32
    return %arg0, %c0_i32 : i32, i32
  }
  func.func @transform_4(%arg0: i32) -> (i32, i32, i32) {
    %c0_i32 = arith.constant 0 : i32
    %c0_i32_0 = arith.constant 0 : i32
    %c0_i32_1 = arith.constant 0 : i32
    return %arg0, %c0_i32, %c0_i32_0 : i32, i32, i32
  }
  func.func @transform_5(%arg0: i32) -> (i32, i32, i32) {
    %c0_i32 = arith.constant 0 : i32
    %c0_i32_0 = arith.constant 0 : i32
    %c0_i32_1 = arith.constant 0 : i32
    return %arg0, %c0_i32, %c0_i32_0 : i32, i32, i32
  }
  func.func @transform_6(%arg0: i32) -> (i32, i32, i32) {
    %c0_i32 = arith.constant 0 : i32
    %c0_i32_0 = arith.constant 0 : i32
    %c0_i32_1 = arith.constant 0 : i32
    return %arg0, %c0_i32, %c0_i32_0 : i32, i32, i32
  }
}

</mosaic_0001>

<bundles_post_ra>
// kernel: overlap_loss.1
= control target key start
LH: loop header
LB: loop body
LE: loop exit
PB: predicated region body
PF: predicated region fallthrough
CT: control target
= control target key end

     0   :  { %v2222_v0 = vmov 0   ;;  %v87_v3 = vlaneseq  ;;  %v2223_v62 = vmov 1.0   ;;  %s2225_s12 = smov 127   ;;  %s2818_s3 = inlined_call_operand.vmem [shape: s32[128,1], index: 3, kind: input, shape index: {}]   ;;  %s2819_s1 = inlined_call_operand.vmem [shape: s32[1,128], index: 1, kind: input, shape index: {}]   ;;  %s2820_s0 = inlined_call_operand.vmem [shape: f32[128,4], index: 0, kind: input, shape index: {}]   ;;  %s2821_s2 = inlined_call_operand.vmem [shape: s32[128,1], index: 2, kind: input, shape index: {}]   ;;  %s2822_s6 = inlined_call_operand.vmem [shape: f32[1,8,128], index: 6, kind: output, shape index: {2}]   ;;  %s2823_s5 = inlined_call_operand.vmem [shape: f32[1,8,128], index: 5, kind: output, shape index: {1}]   ;;  %s2824_s4 = inlined_call_operand.vmem [shape: f32[1,8,128], index: 4, kind: output, shape index: {0}]  }
   0x1   :  { %2218 = vset.pattern.permute.xlu0 %v2222_v0  ;;  %v71_v1 = vld [vmem:[%s2818_s3] sm:$0xff]  ;;  %2219 = vset.pattern.permute.xlu1 %v2222_v0  ;;  %v72_v2 = vld [vmem:[%s2818_s3 + $0x8] sm:$0xff]  ;;  %v36_v14 = vld [vmem:[%s2820_s0 + $0x78] sm:$0xff] }
   0x2   :  { %480 = vperm.xlu0 %2218, %v71_v1   ;;  %v2272_v4 = vand.u32 127, %v87_v3  ;;  %v2277_v5 = vld [vmem:[%s2819_s1] ss:$0 sm:$0xff]  ;;  %v35_v15 = vld [vmem:[%s2820_s0 + $0x70] sm:$0xff]  ;;  %2124 = vmatprep.subr.mxu0 %v36_v14  ;;  %v34_v16 = vld [vmem:[%s2820_s0 + $0x68] sm:$0xff] }
   0x3   :  { %2180 = vmatprep.subr.mxu1 %v36_v14  ;;  %2125 = vmatpush3.msra.mxu0 %v36_v14  ;;  %v33_v17 = vld [vmem:[%s2820_s0 + $0x60] sm:$0xff]  ;;  %v32_v18 = vld [vmem:[%s2820_s0 + $0x58] sm:$0xff]  ;;  %v31_v19 = vld [vmem:[%s2820_s0 + $0x50] sm:$0xff] }
   0x4   :  { %2196 = vmatpush3.msra.mxu1 %v36_v14  ;;  %2126 = vmatprep.subr.mxu0 %v35_v15  ;;  %v30_v20 = vld [vmem:[%s2820_s0 + $0x48] sm:$0xff]  ;;  %v29_v21 = vld [vmem:[%s2820_s0 + $0x40] sm:$0xff]  ;;  %v28_v22 = vld [vmem:[%s2820_s0 + $0x38] sm:$0xff] }
   0x5   :  { %2181 = vmatprep.subr.mxu1 %v35_v15  ;;  %2127 = vmatpush3.msra.mxu0 %v35_v15  ;;  %v27_v23 = vld [vmem:[%s2820_s0 + $0x30] sm:$0xff]  ;;  %v26_v24 = vld [vmem:[%s2820_s0 + $0x28] sm:$0xff]  ;;  %v25_v33 = vld [vmem:[%s2820_s0 + $0x20] sm:$0xff] }
   0x6   :  { %483 = vperm.xlu0 %2218, %v72_v2   ;;  %2197 = vmatpush3.msra.mxu1 %v35_v15  ;;  %v24_v34 = vld [vmem:[%s2820_s0 + $0x18] sm:$0xff]  ;;  %v23_v35 = vld [vmem:[%s2820_s0 + $0x10] sm:$0xff]  ;;  %v22_v36 = vld [vmem:[%s2820_s0 + $0x8] sm:$0xff] }
   0x7   :  { %2128 = vmatprep.subr.mxu0 %v34_v16  ;;  %2182 = vmatprep.subr.mxu1 %v34_v16  ;;  %v2365_v37 = vld [vmem:[%s2820_s0] sm:$0xff]  ;;  %v74_v39 = vld [vmem:[%s2818_s3 + $0x18] sm:$0xff]  ;;  %v80_v40 = vld [vmem:[%s2818_s3 + $0x48] sm:$0xff]  ;;  %s2226_s0 = smov 126  }
   0x8   :  { %2129 = vmatpush3.msra.mxu0 %v34_v16  ;;  %2198 = vmatpush3.msra.mxu1 %v34_v16  ;;  %v79_v38 = vld [vmem:[%s2818_s3 + $0x40] sm:$0xff]  ;;  %v77_v41 = vld [vmem:[%s2818_s3 + $0x30] sm:$0xff]  ;;  %v78_v43 = vld [vmem:[%s2818_s3 + $0x38] sm:$0xff] }
   0x9   :  { %2130 = vmatprep.subr.mxu0 %v33_v17  ;;  %2183 = vmatprep.subr.mxu1 %v33_v17  ;;  %v73_v42 = vld [vmem:[%s2818_s3 + $0x10] sm:$0xff]  ;;  %v82_v45 = vld [vmem:[%s2818_s3 + $0x58] sm:$0xff]  ;;  %v75_v46 = vld [vmem:[%s2818_s3 + $0x20] sm:$0xff] }
   0xa   :  { %2131 = vmatpush3.msra.mxu0 %v33_v17  ;;  %2199 = vmatpush3.msra.mxu1 %v33_v17  ;;  %v81_v44 = vld [vmem:[%s2818_s3 + $0x50] sm:$0xff]  ;;  %v83_v47 = vld [vmem:[%s2818_s3 + $0x60] sm:$0xff]  ;;  %v76_v48 = vld [vmem:[%s2818_s3 + $0x28] sm:$0xff] }
   0xb   :  { %2132 = vmatprep.subr.mxu0 %v32_v18  ;;  %2184 = vmatprep.subr.mxu1 %v32_v18  ;;  %v84_v49 = vld [vmem:[%s2818_s3 + $0x68] sm:$0xff]  ;;  %v85_v50 = vld [vmem:[%s2818_s3 + $0x70] sm:$0xff]  ;;  %v86_v51 = vld [vmem:[%s2818_s3 + $0x78] sm:$0xff] }
   0xc   :  { %2133 = vmatpush3.msra.mxu0 %v32_v18  ;;  %2200 = vmatpush3.msra.mxu1 %v32_v18 }
   0xd   :  { %2134 = vmatprep.subr.mxu0 %v31_v19  ;;  %2185 = vmatprep.subr.mxu1 %v31_v19 }
   0xe   :  { %2135 = vmatpush3.msra.mxu0 %v31_v19  ;;  %2201 = vmatpush3.msra.mxu1 %v31_v19 }
   0xf   :  { %2136 = vmatprep.subr.mxu0 %v30_v20  ;;  %2186 = vmatprep.subr.mxu1 %v30_v20 }
  0x10   :  { %2137 = vmatpush3.msra.mxu0 %v30_v20  ;;  %2202 = vmatpush3.msra.mxu1 %v30_v20 }
  0x11   :  { %2138 = vmatprep.subr.mxu0 %v29_v21  ;;  %2187 = vmatprep.subr.mxu1 %v29_v21 }
  0x12   :  { %2139 = vmatpush3.msra.mxu0 %v29_v21  ;;  %2203 = vmatpush3.msra.mxu1 %v29_v21 }
  0x13   :  { %2140 = vmatprep.subr.mxu0 %v28_v22  ;;  %2188 = vmatprep.subr.mxu1 %v28_v22 }
  0x14   :  { %2141 = vmatpush3.msra.mxu0 %v28_v22  ;;  %2204 = vmatpush3.msra.mxu1 %v28_v22 }
  0x15   :  { %2142 = vmatprep.subr.mxu0 %v27_v23  ;;  %2189 = vmatprep.subr.mxu1 %v27_v23 }
  0x16   :  { %2143 = vmatpush3.msra.mxu0 %v27_v23  ;;  %2205 = vmatpush3.msra.mxu1 %v27_v23 }
  0x17   :  { %2144 = vmatprep.subr.mxu0 %v26_v24  ;;  %2190 = vmatprep.subr.mxu1 %v26_v24 }
  0x18   :  { %2145 = vmatpush3.msra.mxu0 %v26_v24  ;;  %2206 = vmatpush3.msra.mxu1 %v26_v24 }
  0x19   :  { %2146 = vmatprep.subr.mxu0 %v25_v33  ;;  %2191 = vmatprep.subr.mxu1 %v25_v33 }
  0x1a   :  { %2147 = vmatpush3.msra.mxu0 %v25_v33  ;;  %2207 = vmatpush3.msra.mxu1 %v25_v33 }
  0x1b   :  { %2148 = vmatprep.subr.mxu0 %v24_v34  ;;  %2192 = vmatprep.subr.mxu1 %v24_v34 }
  0x1c   :  { %2149 = vmatpush3.msra.mxu0 %v24_v34  ;;  %2208 = vmatpush3.msra.mxu1 %v24_v34 }
  0x1d   :  { %2150 = vmatprep.subr.mxu0 %v23_v35  ;;  %2193 = vmatprep.subr.mxu1 %v23_v35 }
  0x1e   :  { %2151 = vmatpush3.msra.mxu0 %v23_v35  ;;  %2209 = vmatpush3.msra.mxu1 %v23_v35 }
  0x1f   :  { %2152 = vmatprep.subr.mxu0 %v22_v36  ;;  %2194 = vmatprep.subr.mxu1 %v22_v36 }
  0x20   :  { %2153 = vmatpush3.msra.mxu0 %v22_v36  ;;  %2210 = vmatpush3.msra.mxu1 %v22_v36 }
  0x21   :  { %2154 = vmatprep.subr.mxu0 %v2365_v37  ;;  %2195 = vmatprep.subr.mxu1 %v2365_v37 }
  0x22   :  { %2155 = vmatpush3.msra.mxu0 %v2365_v37  ;;  %2211 = vmatpush3.msra.mxu1 %v2365_v37 }
  0x7d   :  { %v2279_v6 = vpop.permute.xlu0 %480 }
  0x7e   :  { %vm527_vm0 = vcmp.eq.s32.totalorder %v2279_v6, %v2277_v5 }
  0x7f   :  { %v2287_v7 = vsel %vm527_vm0, %v2272_v4, 4294967295 }
  0x80   :  { %v560_v8 = vshra.s32 %v2287_v7, 16  ;;  %v559_v25 = vand.u32 65535, %v2287_v7 }
  0x81   :  { %v2290_v9 = vpop.permute.xlu0 %483 }
  0x82   :  { %vm528_vm1 = vcmp.eq.s32.totalorder %v2290_v9, %v2277_v5  ;;  %v2294_v10 = vcvt.s32.f32 %v560_v8  ;;  %v561_v28 = vcvt.s32.f32 %v559_v25 }
  0x83   :  { %v2300_v11 = vsel %vm528_vm1, %v2272_v4, 4294967295 }
  0x84   :  { %563 = vmax.xlane.f32.xlu1 %v2294_v10  ;;  %v574_v12 = vshra.s32 %v2300_v11, 16  ;;  %v573_v26 = vand.u32 65535, %v2300_v11 }
  0x86   :  { %v2304_v13 = vcvt.s32.f32 %v574_v12  ;;  %v575_v31 = vcvt.s32.f32 %v573_v26 }
  0x88   :  { %577 = vmax.xlane.f32.xlu1 %v2304_v13 }
 0x10d   :  { %v2342_v27 = vpop.xlane.xlu1 %563 }
 0x10e   :  { %vm565_vm2 = vcmp.eq.f32.partialorder %v2294_v10, %v2342_v27  ;;  %v570_v52 = vcvt.f32.s32 %v2342_v27 }
 0x10f   :  { %v566_v29 = vsel %vm565_vm2, %v561_v28, -inf }
 0x110   :  { %567 = vmax.xlane.f32.xlu0 %v566_v29  ;;  %v571_v54 = vshll.u32 %v570_v52, 16 }
 0x111   :  { %v2346_v30 = vpop.xlane.xlu1 %577 }
 0x112   :  { %vm579_vm3 = vcmp.eq.f32.partialorder %v2304_v13, %v2346_v30  ;;  %v584_v55 = vcvt.f32.s32 %v2346_v30 }
 0x113   :  { %v580_v32 = vsel %vm579_vm3, %v575_v31, -inf }
 0x114   :  { %581 = vmax.xlane.f32.xlu1 %v580_v32  ;;  %v585_v59 = vshll.u32 %v584_v55, 16 }
 0x125   :  { %504 = vperm.xlu1 %2219, %v79_v38  }
 0x126   :  { %489 = vperm.xlu0 %2218, %v74_v39  }
 0x129   :  { %507 = vperm.xlu1 %2219, %v80_v40  }
 0x12a   :  { %498 = vperm.xlu0 %2218, %v77_v41  }
 0x12d   :  { %486 = vperm.xlu1 %2219, %v73_v42  }
 0x12e   :  { %501 = vperm.xlu0 %2218, %v78_v43  }
 0x131   :  { %510 = vperm.xlu1 %2219, %v81_v44  }
 0x135   :  { %513 = vperm.xlu1 %2219, %v82_v45  }
 0x139   :  { %492 = vperm.xlu1 %2219, %v75_v46  }
 0x13d   :  { %516 = vperm.xlu1 %2219, %v83_v47  }
 0x141   :  { %495 = vperm.xlu1 %2219, %v76_v48  }
 0x145   :  { %519 = vperm.xlu1 %2219, %v84_v49  }
 0x149   :  { %522 = vperm.xlu1 %2219, %v85_v50  }
 0x14d   :  { %525 = vperm.xlu1 %2219, %v86_v51  }
 0x199   :  { %v568_v53 = vpop.xlane.xlu0 %567 }
 0x19a   :  { %v569_v56 = vcvt.f32.s32 %v568_v53 }
 0x19c   :  { %v572_v57 = vadd.s32 %v571_v54, %v569_v56 }
 0x19d   :  { %v582_v58 = vpop.xlane.xlu1 %581 }
 0x19e   :  { %v583_v60 = vcvt.f32.s32 %v582_v58  ;;  %vm783_vm4 = vcmp.eq.s32.totalorder %v2272_v4, %v572_v57 }
 0x19f   :  { %vm799_vm5 = vmand %vm527_vm0, %vm783_vm4 }
 0x1a0   :  { %v586_v61 = vadd.s32 %v585_v59, %v583_v60  ;;  %2156 = vmatprep.mubr.msk.f32.mxu0 %vm799_vm5, %v2223_v62  ;;  %v2624_v60 = vld [vmem:[%s2821_s2] sm:$0xff]  ;;  %s2224_s2 = smov 2  }
 0x1a1   :  { %v2420_v63 = vpop.permute.xlu1 %504  ;;  %v2422_v1 = vpop.permute.xlu0 %489 }
 0x1a2   :  { %vm535_vm6 = vcmp.eq.s32.totalorder %v2420_v63, %v2277_v5  ;;  %vm784_vm7 = vcmp.eq.s32.totalorder %v2272_v4, %v586_v61  ;;  %vm530_vm9 = vcmp.eq.s32.totalorder %v2422_v1, %v2277_v5 }
 0x1a3   :  { %v2431_v2 = vsel %vm535_vm6, %v2272_v4, 4294967295  ;;  %vm800_vm8 = vmand %vm528_vm1, %vm784_vm7  ;;  %v2450_v9 = vsel %vm530_vm9, %v2272_v4, 4294967295 }
 0x1a4   :  { %2157 = vmatmul.mubr.msk.f32.vlgmr.msra.gmra.mxu0 %vm800_vm8, %v2223_v62  ;;  %v672_v6 = vshra.s32 %v2431_v2, 16  ;;  %v602_v14 = vshra.s32 %v2450_v9, 16  ;;  %v671_v61 = vand.u32 65535, %v2431_v2 }
 0x1a5   :  { %v2440_v7 = vpop.permute.xlu1 %507  ;;  %v2512_v28 = vpop.permute.xlu0 %498 }
 0x1a6   :  { %vm536_vm10 = vcmp.eq.s32.totalorder %v2440_v7, %v2277_v5  ;;  %v2444_v8 = vcvt.s32.f32 %v672_v6  ;;  %v2481_v19 = vcvt.s32.f32 %v602_v14  ;;  %vm533_vm0 = vcmp.eq.s32.totalorder %v2512_v28, %v2277_v5 }
 0x1a7   :  { %v2456_v10 = vsel %vm536_vm10, %v2272_v4, 4294967295  ;;  %v2550_v39 = vsel %vm533_vm0, %v2272_v4, 4294967295  ;;  %v673_v14 = vcvt.s32.f32 %v671_v61 }
 0x1a8   :  { %675 = vmax.xlane.f32.xlu0 %v2444_v8  ;;  %v686_v11 = vshra.s32 %v2456_v10, 16  ;;  %v644_v44 = vshra.s32 %v2550_v39, 16  ;;  %v685_v6 = vand.u32 65535, %v2456_v10 }
 0x1a9   :  { %v2460_v12 = vpop.permute.xlu1 %486  ;;  %v2538_v35 = vpop.permute.xlu0 %501 }
 0x1aa   :  { %vm529_vm11 = vcmp.eq.s32.totalorder %v2460_v12, %v2277_v5  ;;  %v2464_v13 = vcvt.s32.f32 %v686_v11  ;;  %vm534_vm2 = vcmp.eq.s32.totalorder %v2538_v35, %v2277_v5  ;;  %v2589_v50 = vcvt.s32.f32 %v644_v44 }
 0x1ab   :  { %v2471_v15 = vsel %vm529_vm11, %v2272_v4, 4294967295  ;;  %v2573_v45 = vsel %vm534_vm2, %v2272_v4, 4294967295 }
 0x1ac   :  { %689 = vmax.xlane.f32.xlu1 %v2464_v13  ;;  %v588_v16 = vshra.s32 %v2471_v15, 16  ;;  %v658_v51 = vshra.s32 %v2573_v45, 16 }
 0x1ad   :  { %v2475_v17 = vpop.permute.xlu1 %510 }
 0x1ae   :  { %vm537_vm12 = vcmp.eq.s32.totalorder %v2475_v17, %v2277_v5  ;;  %v2479_v18 = vcvt.s32.f32 %v588_v16  ;;  %v2607_v56 = vcvt.s32.f32 %v658_v51 }
 0x1af   :  { %v2487_v20 = vsel %vm537_vm12, %v2272_v4, 4294967295 }
 0x1b0   :  { %591 = vmax.xlane.f32.xlu0 %v2479_v18  ;;  %605 = vmax.xlane.f32.xlu1 %v2481_v19  ;;  %v700_v21 = vshra.s32 %v2487_v20, 16  ;;  %v699_v10 = vand.u32 65535, %v2487_v20 }
 0x1b1   :  { %v2492_v22 = vpop.permute.xlu1 %513 }
 0x1b2   :  { %vm538_vm13 = vcmp.eq.s32.totalorder %v2492_v22, %v2277_v5  ;;  %v2496_v23 = vcvt.s32.f32 %v700_v21  ;;  %v601_v21 = vand.u32 65535, %v2450_v9  ;;  %v701_v20 = vcvt.s32.f32 %v699_v10 }
 0x1b3   :  { %v2502_v24 = vsel %vm538_vm13, %v2272_v4, 4294967295 }
 0x1b4   :  { %703 = vmax.xlane.f32.xlu0 %v2496_v23  ;;  %v714_v25 = vshra.s32 %v2502_v24, 16 }
 0x1b5   :  { %v2506_v26 = vpop.permute.xlu1 %492 }
 0x1b6   :  { %vm531_vm14 = vcmp.eq.s32.totalorder %v2506_v26, %v2277_v5  ;;  %v2510_v27 = vcvt.s32.f32 %v714_v25  ;;  %v587_v25 = vand.u32 65535, %v2471_v15 }
 0x1b7   :  { %v2518_v29 = vsel %vm531_vm14, %v2272_v4, 4294967295 }
 0x1b8   :  { %717 = vmax.xlane.f32.xlu0 %v2510_v27  ;;  %v616_v30 = vshra.s32 %v2518_v29, 16 }
 0x1b9   :  { %v2522_v31 = vpop.permute.xlu1 %516 }
 0x1ba   :  { %vm539_vm15 = vcmp.eq.s32.totalorder %v2522_v31, %v2277_v5  ;;  %v2526_v32 = vcvt.s32.f32 %v616_v30 }
 0x1bb   :  { %v2532_v33 = vsel %vm539_vm15, %v2272_v4, 4294967295 }
 0x1bc   :  { %619 = vmax.xlane.f32.xlu1 %v2526_v32  ;;  %v728_v34 = vshra.s32 %v2532_v33, 16 }
 0x1bd   :  { %v2540_v36 = vpop.permute.xlu1 %495 }
 0x1be   :  { %vm532_vm1 = vcmp.eq.s32.totalorder %v2540_v36, %v2277_v5  ;;  %v2544_v38 = vcvt.s32.f32 %v728_v34  ;;  %v687_v34 = vcvt.s32.f32 %v685_v6 }
 0x1bf   :  { %v2556_v40 = vsel %vm532_vm1, %v2272_v4, 4294967295 }
 0x1c0   :  { %731 = vmax.xlane.f32.xlu0 %v2544_v38  ;;  %v630_v41 = vshra.s32 %v2556_v40, 16 }
 0x1c1   :  { %v2562_v42 = vpop.permute.xlu1 %519 }
 0x1c2   :  { %vm540_vm3 = vcmp.eq.s32.totalorder %v2562_v42, %v2277_v5  ;;  %v2566_v43 = vcvt.s32.f32 %v630_v41 }
 0x1c3   :  { %v2579_v46 = vsel %vm540_vm3, %v2272_v4, 4294967295 }
 0x1c4   :  { %633 = vmax.xlane.f32.xlu1 %v2566_v43  ;;  %v742_v47 = vshra.s32 %v2579_v46, 16 }
 0x1c5   :  { %v2583_v48 = vpop.permute.xlu1 %522 }
 0x1c6   :  { %vm2826_vm4 = vcmp.eq.s32.totalorder %v2583_v48, %v2277_v5  ;;  %v2587_v49 = vcvt.s32.f32 %v742_v47  ;;  %v589_v47 = vcvt.s32.f32 %v587_v25 }
 0x1c7   :  { %v2596_v52 = vsel %vm2826_vm4, %v2272_v4, 4294967295 }
 0x1c8   :  { %745 = vmax.xlane.f32.xlu0 %v2587_v49  ;;  %647 = vmax.xlane.f32.xlu1 %v2589_v50  ;;  %v756_v53 = vshra.s32 %v2596_v52, 16 }
 0x1c9   :  { %v2601_v54 = vpop.permute.xlu1 %525 }
 0x1ca   :  { %vm2825_vm5 = vcmp.eq.s32.totalorder %v2601_v54, %v2277_v5  ;;  %v2605_v55 = vcvt.s32.f32 %v756_v53 }
 0x1cb   :  { %v2613_v57 = vsel %vm2825_vm5, %v2272_v4, 4294967295 }
 0x1cc   :  { %759 = vmax.xlane.f32.xlu0 %v2605_v55  ;;  %661 = vmax.xlane.f32.xlu1 %v2607_v56  ;;  %v770_v58 = vshra.s32 %v2613_v57, 16 }
 0x1ce   :  { %v2618_v59 = vcvt.s32.f32 %v770_v58  ;;  %v615_v58 = vand.u32 65535, %v2518_v29  ;;  %v629_v29 = vand.u32 65535, %v2556_v40  ;;  %v643_v40 = vand.u32 65535, %v2550_v39 }
 0x1d0   :  { %773 = vmax.xlane.f32.xlu0 %v2618_v59 }
 0x1dd   :  { %124 = vperm.xlu1 %2219, %v2624_v60  }
 0x231   :  { %v2629_v11 = vpop.xlane.xlu0 %675 }
 0x232   :  { %vm677_vm7 = vcmp.eq.f32.partialorder %v2444_v8, %v2629_v11  ;;  %v603_v8 = vcvt.s32.f32 %v601_v21 }
 0x233   :  { %v678_v16 = vsel %vm677_vm7, %v673_v14, -inf  ;;  %v617_v14 = vcvt.s32.f32 %v615_v58 }
 0x234   :  { %679 = vmax.xlane.f32.xlu0 %v678_v16 }
 0x235   :  { %v2635_v30 = vpop.xlane.xlu1 %689 }
 0x236   :  { %vm691_vm8 = vcmp.eq.f32.partialorder %v2464_v13, %v2635_v30  ;;  %v713_v13 = vand.u32 65535, %v2502_v24  ;;  %v727_v24 = vand.u32 65535, %v2532_v33  ;;  %v741_v33 = vand.u32 65535, %v2579_v46 }
 0x237   :  { %v692_v2 = vsel %vm691_vm8, %v687_v34, -inf  ;;  %v631_v34 = vcvt.s32.f32 %v629_v29 }
 0x238   :  { %693 = vmax.xlane.f32.xlu0 %v692_v2  ;;  %v715_v61 = vcvt.s32.f32 %v713_v13  ;;  %v729_v21 = vcvt.s32.f32 %v727_v24  ;;  %v657_v2 = vand.u32 65535, %v2573_v45 }
 0x239   :  { %v2640_v41 = vpop.xlane.xlu1 %605  ;;  %v2642_v44 = vpop.xlane.xlu0 %591 }
 0x23a   :  { %vm607_vm7 = vcmp.eq.f32.partialorder %v2481_v19, %v2640_v41  ;;  %vm593_vm5 = vcmp.eq.f32.partialorder %v2479_v18, %v2642_v44 }
 0x23b   :  { %v608_v9 = vsel %vm607_vm7, %v603_v8, -inf  ;;  %v594_v15 = vsel %vm593_vm5, %v589_v47, -inf  ;;  %v769_v47 = vand.u32 65535, %v2613_v57 }
 0x23c   :  { %609 = vmax.xlane.f32.xlu1 %v608_v9  ;;  %595 = vmax.xlane.f32.xlu0 %v594_v15  ;;  %v659_v9 = vcvt.s32.f32 %v657_v2  ;;  %v645_v15 = vcvt.s32.f32 %v643_v40  ;;  %v598_v2 = vcvt.f32.s32 %v2642_v44 }
 0x23d   :  { %v2649_v51 = vpop.xlane.xlu0 %703  ;;  %v771_v57 = vcvt.s32.f32 %v769_v47 }
 0x23e   :  { %vm705_vm8 = vcmp.eq.f32.partialorder %v2496_v23, %v2649_v51 }
 0x23f   :  { %v706_v53 = vsel %vm705_vm8, %v701_v20, -inf }
 0x240   :  { %707 = vmax.xlane.f32.xlu0 %v706_v53 }
 0x241   :  { %v2654_v19 = vpop.xlane.xlu0 %717 }
 0x242   :  { %vm719_vm5 = vcmp.eq.f32.partialorder %v2510_v27, %v2654_v19 }
 0x243   :  { %v720_v18 = vsel %vm719_vm5, %v715_v61, -inf }
 0x244   :  { %721 = vmax.xlane.f32.xlu0 %v720_v18 }
 0x245   :  { %v2659_v6 = vpop.xlane.xlu1 %619 }
 0x246   :  { %vm621_vm7 = vcmp.eq.f32.partialorder %v2526_v32, %v2659_v6 }
 0x247   :  { %v622_v23 = vsel %vm621_vm7, %v617_v14, -inf  ;;  %v682_v14 = vcvt.f32.s32 %v2629_v11 }
 0x248   :  { %623 = vmax.xlane.f32.xlu0 %v622_v23 }
 0x249   :  { %v2664_v16 = vpop.xlane.xlu0 %731  ;;  %v683_v29 = vshll.u32 %v682_v14, 16 }
 0x24a   :  { %vm733_vm8 = vcmp.eq.f32.partialorder %v2544_v38, %v2664_v16  ;;  %v743_v38 = vcvt.s32.f32 %v741_v33  ;;  %v738_v1 = vcvt.f32.s32 %v2664_v16 }
 0x24b   :  { %v734_v27 = vsel %vm733_vm8, %v729_v21, -inf  ;;  %v696_v21 = vcvt.f32.s32 %v2635_v30  ;;  %v710_v30 = vcvt.f32.s32 %v2649_v51 }
 0x24c   :  { %735 = vmax.xlane.f32.xlu0 %v734_v27  ;;  %v739_v17 = vshll.u32 %v738_v1, 16 }
 0x24d   :  { %v2669_v25 = vpop.xlane.xlu1 %633  ;;  %v697_v40 = vshll.u32 %v696_v21, 16 }
 0x24e   :  { %vm635_vm5 = vcmp.eq.f32.partialorder %v2566_v43, %v2669_v25  ;;  %v755_v43 = vand.u32 65535, %v2596_v52  ;;  %v640_v14 = vcvt.f32.s32 %v2669_v25 }
 0x24f   :  { %v636_v32 = vsel %vm635_vm5, %v631_v34, -inf  ;;  %v612_v34 = vcvt.f32.s32 %v2640_v41  ;;  %v599_v41 = vshll.u32 %v598_v2, 16 }
 0x250   :  { %637 = vmax.xlane.f32.xlu0 %v636_v32  ;;  %v757_v52 = vcvt.s32.f32 %v755_v43  ;;  %v641_v22 = vshll.u32 %v640_v14, 16 }
 0x251   :  { %v2675_v10 = vpop.xlane.xlu1 %647  ;;  %v2677_v8 = vpop.xlane.xlu0 %745 }
 0x252   :  { %vm747_vm7 = vcmp.eq.f32.partialorder %v2587_v49, %v2677_v8  ;;  %vm649_vm8 = vcmp.eq.f32.partialorder %v2589_v50, %v2675_v10  ;;  %v752_v21 = vcvt.f32.s32 %v2677_v8  ;;  %v654_v26 = vcvt.f32.s32 %v2675_v10 }
 0x253   :  { %v748_v46 = vsel %vm747_vm7, %v743_v38, -inf  ;;  %v650_v49 = vsel %vm649_vm8, %v645_v15, -inf }
 0x254   :  { %749 = vmax.xlane.f32.xlu0 %v748_v46  ;;  %v613_v46 = vshll.u32 %v612_v34, 16  ;;  %v753_v34 = vshll.u32 %v752_v21, 16  ;;  %v655_v31 = vshll.u32 %v654_v26, 16 }
 0x255   :  { %v2685_v39 = vpop.xlane.xlu1 %661  ;;  %v2687_v45 = vpop.xlane.xlu0 %759 }
 0x256   :  { %vm663_vm5 = vcmp.eq.f32.partialorder %v2607_v56, %v2685_v39  ;;  %vm761_vm7 = vcmp.eq.f32.partialorder %v2605_v55, %v2687_v45  ;;  %v766_v2 = vcvt.f32.s32 %v2687_v45 }
 0x257   :  { %v664_v13 = vsel %vm663_vm5, %v659_v9, -inf  ;;  %v762_v20 = vsel %vm761_vm7, %v757_v52, -inf  ;;  %v724_v52 = vcvt.f32.s32 %v2654_v19 }
 0x258   :  { %665 = vmax.xlane.f32.xlu1 %v664_v13  ;;  %651 = vmax.xlane.f32.xlu0 %v650_v49  ;;  %v711_v13 = vshll.u32 %v710_v30, 16 }
 0x259   :  { %v2693_v50 = vpop.xlane.xlu0 %773  ;;  %v125_v55 = vpop.permute.xlu1 %124  ;;  %v725_v19 = vshll.u32 %v724_v52, 16 }
 0x25a   :  { %vm775_vm4 = vcmp.eq.f32.partialorder %v2618_v59, %v2693_v50  ;;  %vm175_vm8 = vcmp.eq.s32.totalorder %v125_v55, %v2277_v5 }
 0x25b   :  { %v776_v53 = vsel %vm775_vm4, %v771_v57, -inf  ;;  %v2704_v18 = vsel %vm175_vm8, %v2272_v4, 4294967295 }
 0x25c   :  { %763 = vmax.xlane.f32.xlu0 %v762_v20  ;;  %777 = vmax.xlane.f32.xlu1 %v776_v53  ;;  %v208_v59 = vshra.s32 %v2704_v18, 16  ;;  %v626_v20 = vcvt.f32.s32 %v2659_v6  ;;  %v207_v35 = vand.u32 65535, %v2704_v18 }
 0x25e   :  { %v2707_v24 = vcvt.s32.f32 %v208_v59 }
 0x264   :  { %v2158_v58 = vpop.f32.mrf.mxu0 }
 0x266   :  { %v2697_v56 = vpop.f32.mrf.mxu0 }
 0x267   :  { %v992_v61 = vmax.f32 %v2365_v37, %v2697_v56 }
 0x26d   :  { %1264 = vrot.lane.b32.xlu1 %v992_v61, %s2224_s2  ;;  %v627_v61 = vshll.u32 %v626_v20, 16 }
 0x272   :  { %1600 = vrot.lane.b32.xlu0 %v2365_v37, %s2224_s2 }
 0x291   :  { %211 = vmax.xlane.f32.xlu0 %v2707_v24 }
 0x2bd   :  { %v680_v23 = vpop.xlane.xlu0 %679 }
 0x2be   :  { %v681_v27 = vcvt.f32.s32 %v680_v23 }
 0x2c0   :  { %v684_v33 = vadd.s32 %v683_v29, %v681_v27 }
 0x2c1   :  { %v694_v32 = vpop.xlane.xlu0 %693 }
 0x2c2   :  { %v695_v38 = vcvt.f32.s32 %v694_v32  ;;  %vm791_vm4 = vcmp.eq.s32.totalorder %v2272_v4, %v684_v33  ;;  %v668_v32 = vcvt.f32.s32 %v2685_v39 }
 0x2c3   :  { %vm807_vm5 = vmand %vm535_vm6, %vm791_vm4 }
 0x2c4   :  { %v698_v11 = vadd.s32 %v697_v40, %v695_v38  ;;  %2168 = vmatprep.mubr.msk.f32.mxu1 %vm807_vm5, %v2223_v62  ;;  %v780_v38 = vcvt.f32.s32 %v2693_v50 }
 0x2c5   :  { %v610_v43 = vpop.xlane.xlu1 %609  ;;  %v596_v47 = vpop.xlane.xlu0 %595 }
 0x2c6   :  { %v611_v9 = vcvt.f32.s32 %v610_v43  ;;  %v597_v15 = vcvt.f32.s32 %v596_v47  ;;  %vm792_vm7 = vcmp.eq.s32.totalorder %v2272_v4, %v698_v11  ;;  %v767_v47 = vshll.u32 %v766_v2, 16 }
 0x2c7   :  { %vm808_vm8 = vmand %vm536_vm10, %vm792_vm7 }
 0x2c8   :  { %v614_v44 = vadd.s32 %v613_v46, %v611_v9  ;;  %v600_v63 = vadd.s32 %v599_v41, %v597_v15  ;;  %2169 = vmatmul.mubr.msk.f32.vlgmr.msra.gmra.mxu1 %vm808_vm8, %v2223_v62  ;;  %v669_v46 = vshll.u32 %v668_v32, 16  ;;  %v781_v41 = vshll.u32 %v780_v38, 16 }
 0x2c9   :  { %v708_v49 = vpop.xlane.xlu0 %707 }
 0x2ca   :  { %v709_v51 = vcvt.f32.s32 %v708_v49  ;;  %vm785_vm6 = vcmp.eq.s32.totalorder %v2272_v4, %v600_v63  ;;  %vm786_vm4 = vcmp.eq.s32.totalorder %v2272_v4, %v614_v44  ;;  %v1008_v49 = vmin.f32 %v2365_v37, %v2697_v56 }
 0x2cb   :  { %vm801_vm5 = vmand %vm529_vm11, %vm785_vm6 }
 0x2cc   :  { %v712_v57 = vadd.s32 %v711_v13, %v709_v51  ;;  %2159 = vmatprep.mubr.msk.f32.mxu0 %vm801_vm5, %v2223_v62  ;;  %vm802_vm10 = vmand %vm530_vm9, %vm786_vm4 }
 0x2cd   :  { %v722_v7 = vpop.xlane.xlu0 %721  ;;  %2160 = vmatmul.mubr.msk.f32.gmra.mxu0 %vm802_vm10, %v2223_v62 }
 0x2ce   :  { %v723_v53 = vcvt.f32.s32 %v722_v7  ;;  %vm793_vm7 = vcmp.eq.s32.totalorder %v2272_v4, %v712_v57 }
 0x2cf   :  { %vm809_vm11 = vmand %vm537_vm12, %vm793_vm7 }
 0x2d0   :  { %v726_v12 = vadd.s32 %v725_v19, %v723_v53  ;;  %2171 = vmatprep.mubr.msk.f32.mxu1 %vm809_vm11, %v2223_v62 }
 0x2d1   :  { %v624_v58 = vpop.xlane.xlu0 %623 }
 0x2d2   :  { %v625_v55 = vcvt.f32.s32 %v624_v58  ;;  %vm794_vm9 = vcmp.eq.s32.totalorder %v2272_v4, %v726_v12 }
 0x2d3   :  { %vm810_vm8 = vmand %vm538_vm13, %vm794_vm9 }
 0x2d4   :  { %v628_v6 = vadd.s32 %v627_v61, %v625_v55  ;;  %2172 = vmatmul.mubr.msk.f32.gmra.mxu1 %vm810_vm8, %v2223_v62 }
 0x2d5   :  { %v736_v59 = vpop.xlane.xlu0 %735 }
 0x2d6   :  { %v737_v23 = vcvt.f32.s32 %v736_v59  ;;  %vm787_vm12 = vcmp.eq.s32.totalorder %v2272_v4, %v628_v6 }
 0x2d7   :  { %vm803_vm6 = vmand %vm531_vm14, %vm787_vm12 }
 0x2d8   :  { %v740_v16 = vadd.s32 %v739_v17, %v737_v23  ;;  %2162 = vmatprep.mubr.msk.f32.mxu0 %vm803_vm6, %v2223_v62 }
 0x2d9   :  { %v638_v29 = vpop.xlane.xlu0 %637 }
 0x2da   :  { %v639_v27 = vcvt.f32.s32 %v638_v29  ;;  %vm795_vm13 = vcmp.eq.s32.totalorder %v2272_v4, %v740_v16  ;;  %v90_v16 = vshrl.u32 %v87_v3, 7  ;;  %v1025_v3 = vsub.s32 0, %v2624_v60 }
 0x2db   :  { %vm811_vm4 = vmand %vm539_vm15, %vm795_vm13 }
 0x2dc   :  { %v642_v25 = vadd.s32 %v641_v22, %v639_v27  ;;  %2174 = vmatprep.mubr.msk.f32.mxu1 %vm811_vm4, %v2223_v62  ;;  %v2227_v27 = vmov 0.0   ;;  %v2074_v38 = vmin.u32 %v1025_v3, %v2624_v60 }
 0x2dd   :  { %v750_v33 = vpop.xlane.xlu0 %749 }
 0x2de   :  { %v751_v40 = vcvt.f32.s32 %v750_v33  ;;  %vm788_vm14 = vcmp.eq.s32.totalorder %v2272_v4, %v642_v25 }
 0x2df   :  { %vm804_vm5 = vmand %vm532_vm1, %vm788_vm14 }
 0x2e0   :  { %v754_v8 = vadd.s32 %v753_v34, %v751_v40  ;;  %2163 = vmatmul.mubr.msk.f32.gmra.mxu0 %vm804_vm5, %v2223_v62 }
 0x2e1   :  { %v666_v10 = vpop.xlane.xlu1 %665  ;;  %v652_v11 = vpop.xlane.xlu0 %651 }
 0x2e2   :  { %v667_v30 = vcvt.f32.s32 %v666_v10  ;;  %v653_v39 = vcvt.f32.s32 %v652_v11  ;;  %vm796_vm15 = vcmp.eq.s32.totalorder %v2272_v4, %v754_v8  ;;  %v1028_v10 = vand.u32 3, %v2074_v38 }
 0x2e3   :  { %vm812_vm10 = vmand %vm540_vm3, %vm796_vm15 }
 0x2e4   :  { %v670_v36 = vadd.s32 %v669_v46, %v667_v30  ;;  %v656_v43 = vadd.s32 %v655_v31, %v653_v39  ;;  %2175 = vmatmul.mubr.msk.f32.gmra.mxu1 %vm812_vm10, %v2223_v62  ;;  %v1029_v11 = vsub.s32 0, %v1028_v10  ;;  %vm1024_vm10 = vcmp.lt.s32.totalorder %v2624_v60, 0 }
 0x2e5   :  { %v778_v45 = vpop.xlane.xlu1 %777  ;;  %v764_v9 = vpop.xlane.xlu0 %763 }
 0x2e6   :  { %v779_v50 = vcvt.f32.s32 %v778_v45  ;;  %v765_v15 = vcvt.f32.s32 %v764_v9  ;;  %vm789_vm1 = vcmp.eq.s32.totalorder %v2272_v4, %v656_v43  ;;  %vm790_vm7 = vcmp.eq.s32.totalorder %v2272_v4, %v670_v36 }
 0x2e7   :  { %vm805_vm11 = vmand %vm533_vm0, %vm789_vm1  ;;  %vm2827_vm0 = vcmp.eq.s32.totalorder %v2583_v48, %v2277_v5  ;;  %v209_v48 = vcvt.s32.f32 %v207_v35  ;;  %v1030_v46 = vsel %vm1024_vm10, %v1029_v11, %v1028_v10 }
 0x2e8   :  { %v782_v42 = vadd.s32 %v781_v41, %v779_v50  ;;  %v768_v44 = vadd.s32 %v767_v47, %v765_v15  ;;  %2165 = vmatprep.mubr.msk.f32.mxu0 %vm805_vm11, %v2223_v62  ;;  %vm806_vm3 = vmand %vm534_vm2, %vm790_vm7  ;;  %vm2828_vm2 = vcmp.eq.s32.totalorder %v2601_v54, %v2277_v5  ;;  %vm1136_vm1 = vcmp.ne.s32.totalorder %v1030_v46, 0 }
 0x2e9   :  { %v1601_v63 = vpop.permute.xlu0 %1600  ;;  %2166 = vmatmul.mubr.msk.f32.gmra.mxu0 %vm806_vm3, %v2223_v62  ;;  %v1265_v13 = vpop.permute.xlu1 %1264  ;;  %vm1152_vm7 = vcmp.lt.s32.totalorder %v1030_v46, 0  ;;  %v1184_v30 = vadd.s32 4, %v1030_v46 }
 0x2ea   :  { %v1648_v52 = vsub.f32 %v2365_v37, %v1601_v63  ;;  %vm797_vm9 = vcmp.eq.s32.totalorder %v2272_v4, %v768_v44  ;;  %vm798_vm12 = vcmp.eq.s32.totalorder %v2272_v4, %v782_v42  ;;  %vm1312_vm6 = vcmp.ge.f32.partialorder %v1008_v49, %v1265_v13  ;;  %vm1168_vm11 = vmand %vm1152_vm7, %vm1136_vm1 }
 0x2eb   :  { %vm813_vm8 = vmand %vm2827_vm0, %vm797_vm9  ;;  %v1328_v37 = vsel %vm1312_vm6, 1, %v2222_v0  ;;  %v1488_v28 = vsub.f32 %v1008_v49, %v1265_v13  ;;  %v1200_v39 = vsel %vm1168_vm11, %v1184_v30, %v1030_v46  ;;  %vm1856_vm0 = vcmask 7168  }
 0x2ec   :  { %2177 = vmatprep.mubr.msk.f32.mxu1 %vm813_vm8, %v2223_v62  ;;  %1680 = vrot.lane.b32.xlu1 %v1648_v52, %s2225_s12  ;;  %vm814_vm13 = vmand %vm2828_vm2, %vm798_vm12  ;;  %vm1216_vm3 = vcmp.ne.s32.totalorder %v1200_v39, 0 }
 0x2ed   :  { %2178 = vmatmul.mubr.msk.f32.gmra.mxu1 %vm814_vm13, %v2223_v62 }
 0x2f0   :  { %1344 = vrot.lane.b32.xlu1 %v1328_v37, %s2225_s12 }
 0x2f4   :  { %1520 = vrot.lane.b32.xlu1 %v1488_v28, %s2225_s12 }
 0x31a   :  { %v212_v4 = vpop.xlane.xlu0 %211 }
 0x31b   :  { %vm213_vm4 = vcmp.eq.f32.partialorder %v2707_v24, %v212_v4  ;;  %v218_v6 = vcvt.f32.s32 %v212_v4 }
 0x31c   :  { %v214_v56 = vsel %vm213_vm4, %v209_v48, -inf }
 0x31d   :  { %215 = vmax.xlane.f32.xlu1 %v214_v56 }
 0x35e   :  { %v1681_v51 = vpop.permute.xlu1 %1680 }
 0x35f   :  { %v1728_v57 = vmul.f32 %v1681_v51, %v1648_v52 }
 0x361   :  { %2220 = vrcp.f32 %v1728_v57 }
 0x362   :  { %v1345_v5 = vpop.permute.xlu1 %1344 }
 0x363   :  { %vm1376_vm14 = vcmp.ne.s32.totalorder %v1345_v5, 0 }
 0x364   :  { %vm1392_vm5 = vmand %vm1312_vm6, %vm1376_vm14 }
 0x365   :  { %v1408_v62 = vsel %vm1392_vm5, 1, %v2222_v0  ;;  %v219_v0 = vshll.u32 %v218_v6, 16 }
 0x366   :  { %1424 = vrot.lane.b32.xlu0 %v1408_v62, %s2226_s0  ;;  %v1521_v54 = vpop.permute.xlu1 %1520 }
 0x367   :  { %v1568_v7 = vmul.f32 %v1521_v54, %v1488_v28 }
 0x36e   :  { %v2221_v18 = vpop.eup %2220 }
 0x36f   :  { %v1745_v19 = vmul.f32 %v2221_v18, %v1568_v7 }
 0x371   :  { %1792 = vrot.lane.b32.xlu0 %v1745_v19, %s2226_s0 }
 0x388   :  { %v2170_v20 = vpop.f32.mrf.mxu1 }
 0x38a   :  { %v953_v24 = vpop.f32.mrf.mxu1 }
 0x38d   :  { %v2161_v53 = vpop.f32.mrf.mxu0 }
 0x38f   :  { %v923_v12 = vpop.f32.mrf.mxu0 }
 0x394   :  { %v2173_v58 = vpop.f32.mrf.mxu1 }
 0x396   :  { %v963_v61 = vpop.f32.mrf.mxu1 }
 0x3a0   :  { %v2164_v1 = vpop.f32.mrf.mxu0 }
 0x3a2   :  { %v933_v55 = vpop.f32.mrf.mxu0 }
 0x3a4   :  { %v2176_v59 = vpop.f32.mrf.mxu1 }
 0x3a6   :  { %v973_v17 = vpop.f32.mrf.mxu1  ;;  %v216_v14 = vpop.xlane.xlu1 %215 }
 0x3a7   :  { %v217_v23 = vcvt.f32.s32 %v216_v14 }
 0x3a9   :  { %v220_v29 = vadd.s32 %v219_v0, %v217_v23  ;;  %v2167_v22 = vpop.f32.mrf.mxu0 }
 0x3ab   :  { %v943_v21 = vpop.f32.mrf.mxu0  ;;  %vm431_vm15 = vcmp.eq.s32.totalorder %v220_v29, %v90_v16 }
 0x3ac   :  { %v2091_v25 = vsel %vm431_vm15, 1.0, %v2227_v27  ;;  %vm1232_vm8 = vmand %vm431_vm15, %vm1216_vm3 }
 0x3ad   :  { %v2179_v26 = vpop.f32.mrf.mxu1  ;;  %v2022_v33 = vrot.slane %v2091_v25, 4 }
 0x3af   :  { %v983_v34 = vpop.f32.mrf.mxu1  ;;  %v2023_v32 = vadd.f32 %v2091_v25, %v2022_v33 }
 0x3b1   :  { %v2024_v40 = vrot.slane %v2023_v32, 2 }
 0x3b3   :  { %v2025_v8 = vadd.f32 %v2024_v40, %v2023_v32 }
 0x3b5   :  { %v2026_v31 = vrot.slane %v2025_v8, 1 }
 0x3b7   :  { %v2027_v2 = vadd.f32 %v2026_v31, %v2025_v8 }
 0x3b9   :  { %2028 = vst [vmem:[%s2822_s6] sm:$0xff] %v2027_v2 }
 0x3d8   :  { %v1425_v36 = vpop.permute.xlu0 %1424 }
 0x3d9   :  { %vm1456_vm9 = vcmp.ne.s32.totalorder %v1425_v36, 0 }
 0x3da   :  { %vm1472_vm12 = vmand %vm1232_vm8, %vm1456_vm9 }
 0x3db   :  { %v2090_v43 = vsel %vm1472_vm12, 1.0, %v2227_v27 }
 0x3dc   :  { %v1932_v47 = vsel %vm1856_vm0, %v2090_v43, 0.0 }
 0x3dd   :  { %v1963_v41 = vrot.slane %v1932_v47, 4 }
 0x3df   :  { %v1964_v45 = vadd.f32 %v1963_v41, %v1932_v47 }
 0x3e1   :  { %v1965_v9 = vrot.slane %v1964_v45, 2 }
 0x3e3   :  { %v1793_v50 = vpop.permute.xlu0 %1792  ;;  %v1966_v60 = vadd.f32 %v1965_v9, %v1964_v45 }
 0x3e4   :  { %v1840_v15 = vsel %vm1472_vm12, %v1793_v50, 0.0 }
 0x3e5   :  { %v1857_v42 = vsel %vm1856_vm0, %v1840_v15, 0.0  ;;  %v1967_v44 = vrot.slane %v1966_v60, 1 }
 0x3e6   :  { %v1888_v63 = vrot.slane %v1857_v42, 4 }
 0x3e7   :  { %v1968_v13 = vadd.f32 %v1967_v44, %v1966_v60 }
 0x3e8   :  { %v1889_v49 = vadd.f32 %v1888_v63, %v1857_v42 }
 0x3e9   :  { %1971 = vperm.xlu1 %2219, %v1968_v13  }
 0x3ea   :  { %v1890_v52 = vrot.slane %v1889_v49, 2 }
 0x3ec   :  { %v1891_v37 = vadd.f32 %v1890_v52, %v1889_v49 }
 0x3ee   :  { %v1892_v28 = vrot.slane %v1891_v37, 1 }
 0x3f0   :  { %v1893_v35 = vadd.f32 %v1892_v28, %v1891_v37 }
 0x3f2   :  { %1896 = vperm.xlu0 %2218, %v1893_v35  }
 0x464   :  { %v1972_v4 = vpop.permute.xlu1 %1971 }
 0x465   :  { %1974 = vst [vmem:[%s2823_s5] sm:$0xff] %v1972_v4 }
 0x46d   :  { %v1897_v48 = vpop.permute.xlu0 %1896 }
 0x46e   :  { %1899 = vst [vmem:[%s2824_s4] sm:$0xff] %v1897_v48 }

</bundles_post_ra>
